<compile_context>
chip_gen: v7x
topology: tpu7x:2x2x1
jax: 0.10.0
libtpu: 0.0.40
codegen_flags: <defaults>
</compile_context>

<pallas_src>
import jax
import jax.numpy as jnp
from jax import lax
from jax.experimental import pallas as pl
from jax.experimental.pallas import tpu as pltpu


def _round_up(x, m):
    return ((x + m - 1) // m) * m


def _make_onehot_embed_kernel(nv, tb, emb_dim, card_pads, table_dtype, out_dtype):
    """One-hot MXU gather: out[:, v*D:(v+1)*D] = onehot(idx[:, v]) @ table_v."""

    def kernel(idx_ref, *refs):
        table_refs = refs[:nv]
        out_ref = refs[nv]
        idx = idx_ref[...]                                   # (tb, nv) int32
        for v in range(nv):
            card_pad = card_pads[v]
            rows = idx[:, v:v + 1]                           # (tb, 1)
            iota = lax.broadcasted_iota(jnp.int32, (tb, card_pad), 1)
            onehot = (iota == rows).astype(table_dtype)      # (tb, card_pad)
            emb = jnp.dot(onehot, table_refs[v][...],        # MXU, f32 accum
                          preferred_element_type=jnp.float32)
            out_ref[:, v * emb_dim:(v + 1) * emb_dim] = emb.astype(out_dtype)

    return kernel


def cat_feature_embed(x, tables, *, tb=None):
    """Pallas equivalent of CatFeatureEmbeder.forward.

    x: (batch, num_vars) int array, (batch,) int array (uses tables[0]), or a
       list of num_vars (batch,) int arrays.
    tables: list of (card_v, emb_dim) embedding weights (same dtype / emb_dim).
    Returns: list of (batch, emb_dim) arrays, one per used variable.
    """
    num_vars = len(tables)
    emb_dim = int(tables[0].shape[1])
    dtype = tables[0].dtype
    itemsize = jnp.dtype(dtype).itemsize
    for t in tables:
        assert int(t.shape[1]) == emb_dim and t.dtype == dtype, \
            "all embedding tables must share emb_dim and dtype"

    # ---- normalize indices to batch-major (batch, nv) int32 (no transpose) --
    if isinstance(x, (list, tuple)):
        assert len(x) == num_vars, \
            f"Expected the length of input list {num_vars}, got {len(x)}"
        idx = jnp.stack(
            [jnp.asarray(f).reshape(-1).astype(jnp.int32) for f in x], axis=-1)
        used_tables = list(tables)
    else:
        x = jnp.asarray(x)
        if x.ndim == 1:
            idx = x.astype(jnp.int32)[:, None]               # single variable
            used_tables = [tables[0]]
        else:
            assert x.shape[-1] == num_vars, \
                f"Expected the length of input list {num_vars}, got {x.shape[-1]}"
            idx = x.astype(jnp.int32).reshape(-1, num_vars)
            used_tables = list(tables)

    nv = len(used_tables)
    batch = int(idx.shape[0])

    # ---- batch tiling ------------------------------------------------------
    if tb is None:
        tb = 256
    if batch <= tb:
        tb = max(8, _round_up(batch, 8))                     # one grid step
    batch_pad = _round_up(batch, tb)
    grid = (batch_pad // tb,)
    if batch_pad != batch:
        idx = jnp.pad(idx, ((0, batch_pad - batch), (0, 0))) # pad with index 0

    # ---- pad each table's cardinality to a lane-aligned multiple of 128 -----
    card_pads, padded_tables = [], []
    for t in used_tables:
        card = int(t.shape[0])
        card_pad = _round_up(card, 128)
        card_pads.append(card_pad)
        if card_pad != card:
            t = jnp.pad(t, ((0, card_pad - card), (0, 0)))
        padded_tables.append(t)

    # ---- VMEM budget (tables resident + double-buffered idx/out blocks) -----
    table_bytes = sum(cp * emb_dim * itemsize for cp in card_pads)
    out_blk = tb * nv * emb_dim * itemsize
    idx_blk = tb * 128 * 4                                   # nv lanes pad to 128
    onehot_tmp = tb * max(card_pads) * 4
    est_vmem = table_bytes + 2 * (out_blk + idx_blk) + onehot_tmp
    assert est_vmem < 40 << 20, (
        "embedding tables too large for the whole-table-in-VMEM path; "
        "see TODO(synk) for the chunked DMA-gather fallback")

    kernel = _make_onehot_embed_kernel(nv, tb, emb_dim, tuple(card_pads),
                                       dtype, dtype)

    out = pl.pallas_call(
        kernel,
        out_shape=jax.ShapeDtypeStruct((batch_pad, nv * emb_dim), dtype),
        grid=grid,
        in_specs=[pl.BlockSpec((tb, nv), lambda i: (i, 0))] +          # indices
                 [pl.BlockSpec((cp, emb_dim), lambda i: (0, 0))        # tables
                  for cp in card_pads],                                # (resident)
        out_specs=pl.BlockSpec((tb, nv * emb_dim), lambda i: (i, 0)),
        compiler_params=pltpu.CompilerParams(
            dimension_semantics=("parallel",),               # v7x megacore
            vmem_limit_bytes=int(min(max(2 * est_vmem, 32 << 20), 48 << 20)),
        ),
    )(idx, *padded_tables)

    # Module contract: per-variable list; each is a cheap slice of the slab.
    return [out[:batch, v * emb_dim:(v + 1) * emb_dim] for v in range(nv)]


if __name__ == "__main__":
    key = jax.random.PRNGKey(0)

    # Module config (nn.Embedding-style N(0, 1) init, deterministic)
    cardinalities = [11, 7, 5]
    emb_dim = 32
    batch = 8

    keys = jax.random.split(key, len(cardinalities) + 1)
    tables = [
        jax.random.normal(keys[i], (card, emb_dim), dtype=jnp.float32)
        for i, card in enumerate(cardinalities)
    ]

    # Input: (batch, num_vars) integer categorical codes
    x = jnp.stack([
        jax.random.randint(jax.random.fold_in(keys[-1], i), (batch,), 0, card)
        for i, card in enumerate(cardinalities)
    ], axis=-1).astype(jnp.int32)

    # Reference: plain gather
    refs = [jnp.take(tables[v], x[:, v], axis=0) for v in range(len(tables))]

    # 2-D tensor path
    outs = cat_feature_embed(x, tables)
    outs = [jax.block_until_ready(o) for o in outs]
    for o, r in zip(outs, refs):
        assert o.shape == r.shape and o.dtype == r.dtype
        assert jnp.allclose(o, r, atol=1e-6), "mismatch vs reference gather"

    # 1-D input path (single variable, embeders[0] only)
    out1 = cat_feature_embed(x[:, 0], tables)
    out1 = [jax.block_until_ready(o) for o in out1]
    assert len(out1) == 1
    assert jnp.allclose(out1[0], refs[0], atol=1e-6)

    # list-of-features path
    outl = cat_feature_embed([x[:, v] for v in range(len(tables))], tables)
    outl = [jax.block_until_ready(o) for o in outl]
    for o, r in zip(outl, refs):
        assert jnp.allclose(o, r, atol=1e-6)

    print("KERNEL_OK")
</pallas_src>

<mosaic_0001>
module attributes {stable_mosaic.version = 11 : i64} {
  func.func @kernel(%arg0: i32, %arg1: memref<8x3xi32, #tpu.memory_space<vmem>>, %arg2: memref<128x32xf32, #tpu.memory_space<vmem>>, %arg3: memref<128x32xf32, #tpu.memory_space<vmem>>, %arg4: memref<128x32xf32, #tpu.memory_space<vmem>>, %arg5: memref<8x96xf32, #tpu.memory_space<vmem>>) attributes {dimension_semantics = [#tpu.dimension_semantics<parallel>], iteration_bounds = array<i64: 1>, scalar_prefetch = 0 : i64, scratch_operands = 0 : i64, tpu.core_type = #tpu.core_type<tc>, window_params = [{transform_indices = @transform_0, window_bounds = array<i64: 8, 3>}, {pipeline_mode = #tpu.pipeline_mode<synchronous>, transform_indices = @transform_1, window_bounds = array<i64: 128, 32>}, {pipeline_mode = #tpu.pipeline_mode<synchronous>, transform_indices = @transform_2, window_bounds = array<i64: 128, 32>}, {pipeline_mode = #tpu.pipeline_mode<synchronous>, transform_indices = @transform_3, window_bounds = array<i64: 128, 32>}, {transform_indices = @transform_4, window_bounds = array<i64: 8, 96>}]} {
    %c0 = arith.constant 0 : index
    %c0_0 = arith.constant 0 : index
    %0 = vector.load %arg1[%c0, %c0_0] : memref<8x3xi32, #tpu.memory_space<vmem>>, vector<8x3xi32>
    %1 = vector.extract_strided_slice %0 {offsets = [0, 0], sizes = [8, 1], strides = [1, 1]} : vector<8x3xi32> to vector<8x1xi32>
    %2 = tpu.iota {dimensions = array<i32: 1>} : vector<8x128xi32>
    %3 = vector.broadcast %1 : vector<8x1xi32> to vector<8x128xi32>
    %4 = arith.cmpi eq, %2, %3 : vector<8x128xi32>
    %5 = arith.extui %4 : vector<8x128xi1> to vector<8x128xi32>
    %6 = arith.sitofp %5 : vector<8x128xi32> to vector<8x128xf32>
    %c0_1 = arith.constant 0 : index
    %c0_2 = arith.constant 0 : index
    %7 = vector.load %arg2[%c0_1, %c0_2] : memref<128x32xf32, #tpu.memory_space<vmem>>, vector<128x32xf32>
    %cst = arith.constant dense<0.000000e+00> : vector<8x32xf32>
    %8 = tpu.matmul %6, %7, %cst {dimension_numbers = #tpu.dot_dimension_numbers<[1], [0], [0], [1], [0, 0, 1, 1], [], []>} : vector<8x128xf32>, vector<128x32xf32>, vector<8x32xf32> -> vector<8x32xf32>
    %c0_3 = arith.constant 0 : index
    %c0_4 = arith.constant 0 : index
    %9 = vector.load %arg5[%c0_3, %c0_4] : memref<8x96xf32, #tpu.memory_space<vmem>>, vector<8x32xf32>
    tpu.vector_store %arg5[%c0_3, %c0_4], %8 {strides = array<i32>} : memref<8x96xf32, #tpu.memory_space<vmem>>, vector<8x32xf32>,
    %10 = vector.extract_strided_slice %0 {offsets = [0, 1], sizes = [8, 1], strides = [1, 1]} : vector<8x3xi32> to vector<8x1xi32>
    %11 = tpu.iota {dimensions = array<i32: 1>} : vector<8x128xi32>
    %12 = vector.broadcast %10 : vector<8x1xi32> to vector<8x128xi32>
    %13 = arith.cmpi eq, %11, %12 : vector<8x128xi32>
    %14 = arith.extui %13 : vector<8x128xi1> to vector<8x128xi32>
    %15 = arith.sitofp %14 : vector<8x128xi32> to vector<8x128xf32>
    %c0_5 = arith.constant 0 : index
    %c0_6 = arith.constant 0 : index
    %16 = vector.load %arg3[%c0_5, %c0_6] : memref<128x32xf32, #tpu.memory_space<vmem>>, vector<128x32xf32>
    %cst_7 = arith.constant dense<0.000000e+00> : vector<8x32xf32>
    %17 = tpu.matmul %15, %16, %cst_7 {dimension_numbers = #tpu.dot_dimension_numbers<[1], [0], [0], [1], [0, 0, 1, 1], [], []>} : vector<8x128xf32>, vector<128x32xf32>, vector<8x32xf32> -> vector<8x32xf32>
    %c0_8 = arith.constant 0 : index
    %c32 = arith.constant 32 : index
    %18 = vector.load %arg5[%c0_8, %c32] : memref<8x96xf32, #tpu.memory_space<vmem>>, vector<8x32xf32>
    tpu.vector_store %arg5[%c0_8, %c32], %17 {strides = array<i32>} : memref<8x96xf32, #tpu.memory_space<vmem>>, vector<8x32xf32>,
    %19 = vector.extract_strided_slice %0 {offsets = [0, 2], sizes = [8, 1], strides = [1, 1]} : vector<8x3xi32> to vector<8x1xi32>
    %20 = tpu.iota {dimensions = array<i32: 1>} : vector<8x128xi32>
    %21 = vector.broadcast %19 : vector<8x1xi32> to vector<8x128xi32>
    %22 = arith.cmpi eq, %20, %21 : vector<8x128xi32>
    %23 = arith.extui %22 : vector<8x128xi1> to vector<8x128xi32>
    %24 = arith.sitofp %23 : vector<8x128xi32> to vector<8x128xf32>
    %c0_9 = arith.constant 0 : index
    %c0_10 = arith.constant 0 : index
    %25 = vector.load %arg4[%c0_9, %c0_10] : memref<128x32xf32, #tpu.memory_space<vmem>>, vector<128x32xf32>
    %cst_11 = arith.constant dense<0.000000e+00> : vector<8x32xf32>
    %26 = tpu.matmul %24, %25, %cst_11 {dimension_numbers = #tpu.dot_dimension_numbers<[1], [0], [0], [1], [0, 0, 1, 1], [], []>} : vector<8x128xf32>, vector<128x32xf32>, vector<8x32xf32> -> vector<8x32xf32>
    %c0_12 = arith.constant 0 : index
    %c64 = arith.constant 64 : index
    %27 = vector.load %arg5[%c0_12, %c64] : memref<8x96xf32, #tpu.memory_space<vmem>>, vector<8x32xf32>
    tpu.vector_store %arg5[%c0_12, %c64], %26 {strides = array<i32>} : memref<8x96xf32, #tpu.memory_space<vmem>>, vector<8x32xf32>,
    return
  }
  func.func @transform_0(%arg0: i32) -> (i32, i32) {
    %c0_i32 = arith.constant 0 : i32
    %c0_i32_0 = arith.constant 0 : i32
    return %arg0, %c0_i32 : i32, i32
  }
  func.func @transform_1(%arg0: i32) -> (i32, i32) {
    %c0_i32 = arith.constant 0 : i32
    %c0_i32_0 = arith.constant 0 : i32
    %c0_i32_1 = arith.constant 0 : i32
    return %c0_i32, %c0_i32_0 : i32, i32
  }
  func.func @transform_2(%arg0: i32) -> (i32, i32) {
    %c0_i32 = arith.constant 0 : i32
    %c0_i32_0 = arith.constant 0 : i32
    %c0_i32_1 = arith.constant 0 : i32
    return %c0_i32, %c0_i32_0 : i32, i32
  }
  func.func @transform_3(%arg0: i32) -> (i32, i32) {
    %c0_i32 = arith.constant 0 : i32
    %c0_i32_0 = arith.constant 0 : i32
    %c0_i32_1 = arith.constant 0 : i32
    return %c0_i32, %c0_i32_0 : i32, i32
  }
  func.func @transform_4(%arg0: i32) -> (i32, i32) {
    %c0_i32 = arith.constant 0 : i32
    %c0_i32_0 = arith.constant 0 : i32
    return %arg0, %c0_i32 : i32, i32
  }
}

</mosaic_0001>

<bundles_post_ra>
// kernel: tpu_custom_call.1
= control target key start
LH: loop header
LB: loop body
LE: loop exit
PB: predicated region body
PF: predicated region fallthrough
CT: control target
= control target key end

     0   :  { %v597_v2 = vmov 0   ;;  %v598_v3 = vmov 2   ;;  %v599_v8 = vmov 0.0|0.0   ;;  %vm600_vm0 = vmmov 0   ;;  %s821_s0 = inlined_call_operand.vmem [shape: s32[8,3], index: 0, kind: input, shape index: {}]   ;;  %s822_s1 = inlined_call_operand.vmem [shape: f32[128,32], index: 1, kind: input, shape index: {}]   ;;  %s823_s2 = inlined_call_operand.vmem [shape: f32[128,32], index: 2, kind: input, shape index: {}]   ;;  %s824_s3 = inlined_call_operand.vmem [shape: f32[128,32], index: 3, kind: input, shape index: {}]   ;;  %s825_s4 = inlined_call_operand.hbm [shape: f32[8,96], index: 4, kind: output, shape index: {}]  }
   0x1   :  { %v18_v0 = vld [vmem:[%s821_s0] sm:$0xff]  ;;  %569 = vset.pattern.permute.xlu0 %v597_v2  ;;  %571 = vset.pattern.permute.xlu1 %v598_v3  ;;  %v28_v4 = vld [vmem:[%s822_s1 + $0x8] sm:$0xff]  ;;  %v29_v5 = vld [vmem:[%s822_s1 + $0x10] sm:$0xff]  ;;  %v601_v11 = vmov 0.0   ;;  %v602_v15 = vmov 1  }
   0x2   :  { %v27_v1 = vld [vmem:[%s822_s1] sm:$0xff]  ;;  %v30_v6 = vld [vmem:[%s822_s1 + $0x18] sm:$0xff]  ;;  %22 = vperm.xlu0 %569, %v18_v0   ;;  %214 = vperm.xlu1 %571, %v18_v0   ;;  %v32_v12 = vld [vmem:[%s822_s1 + $0x28] sm:$0xff] }
   0x3   :  { %v488_v7 = vpack.c.bf16 %v28_v4, %v27_v1  ;;  %487 = vmatprep.subr.bf16.mxu0 %v599_v8  ;;  %511 = vmatprep.subr.bf16.mxu1 %v599_v8  ;;  %v491_v9 = vpack.c.bf16 %v30_v6, %v29_v5  ;;  %v31_v10 = vld [vmem:[%s822_s1 + $0x20] sm:$0xff]  ;;  %v122_v14 = vld [vmem:[%s823_s2 + $0x8] sm:$0xff]  ;;  %v123_v17 = vld [vmem:[%s823_s2 + $0x10] sm:$0xff] }
   0x4   :  { %414 = vmatprep.mubr.msk.f32.mxu0 %vm600_vm0, %v601_v11  ;;  %v121_v13 = vld [vmem:[%s823_s2] sm:$0xff]  ;;  %449 = vmatprep.mubr.msk.f32.mxu1 %vm600_vm0, %v601_v11  ;;  %v124_v18 = vld [vmem:[%s823_s2 + $0x18] sm:$0xff]  ;;  %v494_v19 = vpack.c.bf16 %v32_v12, %v31_v10  ;;  %v33_v20 = vld [vmem:[%s822_s1 + $0x30] sm:$0xff] }
   0x5   :  { %489 = vmatpush3.bf16.msra.mxu0 %v488_v7  ;;  %v512_v16 = vpack.c.bf16 %v122_v14, %v121_v13  ;;  %v515_v21 = vpack.c.bf16 %v124_v18, %v123_v17  ;;  %v34_v22 = vld [vmem:[%s822_s1 + $0x38] sm:$0xff]  ;;  %v125_v23 = vld [vmem:[%s823_s2 + $0x20] sm:$0xff]  ;;  %v126_v24 = vld [vmem:[%s823_s2 + $0x28] sm:$0xff] }
   0x6   :  { %490 = vmatprep.subr.bf16.mxu0 %v599_v8  ;;  %570 = vset.pattern.permute.xlu0 %v602_v15 }
   0x7   :  { %116 = vperm.xlu0 %570, %v18_v0   ;;  %513 = vmatpush3.bf16.msra.mxu1 %v512_v16 }
   0x8   :  { %514 = vmatprep.subr.bf16.mxu1 %v599_v8 }
   0x9   :  { %492 = vmatpush3.bf16.msra.mxu0 %v491_v9 }
   0xa   :  { %493 = vmatprep.subr.bf16.mxu0 %v599_v8 }
   0xb   :  { %9 = vsyncpa [#allocation3], 0  ;;  %572 = vset.pattern.permute.xlu0 %v598_v3  ;;  %v497_v25 = vpack.c.bf16 %v34_v22, %v33_v20  ;;  %v35_v26 = vld [vmem:[%s822_s1 + $0x40] sm:$0xff]  ;;  %516 = vmatpush3.bf16.msra.mxu1 %v515_v21  ;;  %v518_v27 = vpack.c.bf16 %v126_v24, %v125_v23  ;;  %v36_v28 = vld [vmem:[%s822_s1 + $0x48] sm:$0xff]  ;;  %v19_v54 = vlaneseq  ;;  %v603_v62 = vmov 1.0   ;;  %s604_s28 = smov 32  }
   0xc   :  { %517 = vmatprep.subr.bf16.mxu1 %v599_v8  ;;  %v127_v29 = vld [vmem:[%s823_s2 + $0x30] sm:$0xff]  ;;  %v128_v30 = vld [vmem:[%s823_s2 + $0x38] sm:$0xff]  ;;  %v500_v31 = vpack.c.bf16 %v36_v28, %v35_v26  ;;  %v129_v35 = vld [vmem:[%s823_s2 + $0x40] sm:$0xff]  ;;  %vm113_vm4 = vcmask 261120   ;;  %vm211_vm5 = vcmask 523520   ;;  %vm309_vm6 = vcmask 785920  }
   0xd   :  { %495 = vmatpush3.bf16.msra.mxu0 %v494_v19  ;;  %v37_v32 = vld [vmem:[%s822_s1 + $0x50] sm:$0xff]  ;;  %v521_v33 = vpack.c.bf16 %v128_v30, %v127_v29  ;;  %v38_v34 = vld [vmem:[%s822_s1 + $0x58] sm:$0xff]  ;;  %v130_v36 = vld [vmem:[%s823_s2 + $0x48] sm:$0xff]  ;;  %v20_v57 = vand.u32 127, %v19_v54 }
   0xe   :  { %496 = vmatprep.subr.bf16.mxu0 %v599_v8  ;;  %v503_v37 = vpack.c.bf16 %v38_v34, %v37_v32  ;;  %v39_v38 = vld [vmem:[%s822_s1 + $0x60] sm:$0xff]  ;;  %v524_v39 = vpack.c.bf16 %v130_v36, %v129_v35  ;;  %v40_v40 = vld [vmem:[%s822_s1 + $0x68] sm:$0xff]  ;;  %v131_v41 = vld [vmem:[%s823_s2 + $0x50] sm:$0xff] }
   0xf   :  { %519 = vmatpush3.bf16.msra.mxu1 %v518_v27  ;;  %v132_v42 = vld [vmem:[%s823_s2 + $0x58] sm:$0xff]  ;;  %v506_v43 = vpack.c.bf16 %v40_v40, %v39_v38  ;;  %v41_v44 = vld [vmem:[%s822_s1 + $0x70] sm:$0xff]  ;;  %v133_v47 = vld [vmem:[%s823_s2 + $0x60] sm:$0xff] }
  0x10   :  { %520 = vmatprep.subr.bf16.mxu1 %v599_v8  ;;  %v527_v45 = vpack.c.bf16 %v132_v42, %v131_v41  ;;  %v42_v46 = vld [vmem:[%s822_s1 + $0x78] sm:$0xff]  ;;  %v134_v48 = vld [vmem:[%s823_s2 + $0x68] sm:$0xff]  ;;  %v135_v51 = vld [vmem:[%s823_s2 + $0x70] sm:$0xff] }
  0x11   :  { %498 = vmatpush3.bf16.msra.mxu0 %v497_v25  ;;  %v509_v49 = vpack.c.bf16 %v42_v46, %v41_v44  ;;  %v530_v50 = vpack.c.bf16 %v134_v48, %v133_v47  ;;  %v136_v52 = vld [vmem:[%s823_s2 + $0x78] sm:$0xff]  ;;  %v219_v55 = vld [vmem:[%s824_s3] sm:$0xff]  ;;  %v220_v56 = vld [vmem:[%s824_s3 + $0x8] sm:$0xff]  ;;  %s605_s2 = smov 64  }
  0x12   :  { %499 = vmatprep.subr.bf16.mxu0 %v599_v8  ;;  %v533_v53 = vpack.c.bf16 %v136_v52, %v135_v51  ;;  %v536_v58 = vpack.c.bf16 %v220_v56, %v219_v55  ;;  %v221_v60 = vld [vmem:[%s824_s3 + $0x10] sm:$0xff]  ;;  %v222_v61 = vld [vmem:[%s824_s3 + $0x18] sm:$0xff]  ;;  %v223_v0 = vld [vmem:[%s824_s3 + $0x20] sm:$0xff] }
  0x13   :  { %522 = vmatpush3.bf16.msra.mxu1 %v521_v33  ;;  %v539_v63 = vpack.c.bf16 %v222_v61, %v221_v60  ;;  %v224_v1 = vld [vmem:[%s824_s3 + $0x28] sm:$0xff]  ;;  %v225_v4 = vld [vmem:[%s824_s3 + $0x30] sm:$0xff]  ;;  %v226_v5 = vld [vmem:[%s824_s3 + $0x38] sm:$0xff] }
  0x14   :  { %523 = vmatprep.subr.bf16.mxu1 %v599_v8  ;;  %v542_v3 = vpack.c.bf16 %v224_v1, %v223_v0  ;;  %v545_v6 = vpack.c.bf16 %v226_v5, %v225_v4  ;;  %v227_v7 = vld [vmem:[%s824_s3 + $0x40] sm:$0xff]  ;;  %v228_v9 = vld [vmem:[%s824_s3 + $0x48] sm:$0xff]  ;;  %v230_v12 = vld [vmem:[%s824_s3 + $0x58] sm:$0xff] }
  0x15   :  { %501 = vmatpush3.bf16.msra.mxu0 %v500_v31  ;;  %v548_v10 = vpack.c.bf16 %v228_v9, %v227_v7  ;;  %v231_v14 = vld [vmem:[%s824_s3 + $0x60] sm:$0xff]  ;;  %v232_v15 = vld [vmem:[%s824_s3 + $0x68] sm:$0xff]  ;;  %v233_v17 = vld [vmem:[%s824_s3 + $0x70] sm:$0xff] }
  0x16   :  { %502 = vmatprep.subr.bf16.mxu0 %v599_v8  ;;  %v554_v16 = vpack.c.bf16 %v232_v15, %v231_v14  ;;  %v234_v18 = vld [vmem:[%s824_s3 + $0x78] sm:$0xff] }
  0x17   :  { %525 = vmatpush3.bf16.msra.mxu1 %v524_v39  ;;  %v557_v19 = vpack.c.bf16 %v234_v18, %v233_v17 }
  0x18   :  { %526 = vmatprep.subr.bf16.mxu1 %v599_v8 }
  0x19   :  { %504 = vmatpush3.bf16.msra.mxu0 %v503_v37 }
  0x1a   :  { %505 = vmatprep.subr.bf16.mxu0 %v599_v8 }
  0x1b   :  { %528 = vmatpush3.bf16.msra.mxu1 %v527_v45 }
  0x1c   :  { %529 = vmatprep.subr.bf16.mxu1 %v599_v8 }
  0x1d   :  { %507 = vmatpush3.bf16.msra.mxu0 %v506_v43 }
  0x1e   :  { %508 = vmatprep.subr.bf16.mxu0 %v599_v8 }
  0x1f   :  { %531 = vmatpush3.bf16.msra.mxu1 %v530_v50 }
  0x20   :  { %532 = vmatprep.subr.bf16.mxu1 %v599_v8 }
  0x21   :  { %510 = vmatpush3.bf16.msra.mxu0 %v509_v49 }
  0x22   :  { %535 = vmatprep.subr.bf16.mxu0 %v599_v8 }
  0x23   :  { %534 = vmatpush3.bf16.msra.mxu1 %v533_v53 }
  0x81   :  { %v23_v59 = vpop.permute.xlu0 %22  ;;  %v215_v20 = vpop.permute.xlu1 %214 }
  0x82   :  { %vm24_vm1 = vcmp.eq.s32.totalorder %v20_v57, %v23_v59  ;;  %vm216_vm3 = vcmp.eq.s32.totalorder %v20_v57, %v215_v20 }
  0x83   :  { %415 = vmatmul.mubr.msk.f32.vlgmr.msra.gmra.mrb[0].mxu0 %vm24_vm1, %v603_v62 }
  0x84   :  { %537 = vmatpush3.bf16.msra.mxu0 %v536_v58  ;;  %484 = vmatprep.mubr.msk.f32.mxu0 %vm600_vm0, %v601_v11  ;;  %v229_v11 = vld [vmem:[%s824_s3 + $0x50] sm:$0xff]  ;;  %s606_s3 = smov [#allocation2]  }
  0x85   :  { %538 = vmatprep.subr.bf16.mxu0 %v599_v8  ;;  %v551_v13 = vpack.c.bf16 %v230_v12, %v229_v11  ;;  %s317_s29 = sshll.u32 %s606_s3, 4  ;;  %s318_s29 = int_to_ptr.vmem [resolvable:$true] %s317_s29 }
  0x86   :  { %v117_v2 = vpop.permute.xlu0 %116  ;;  %s573_s30 = scalar_lea.vmem %s318_s29, 128  ;;  %p578_p1 = scmp.lt.s32.totalorder %s318_s29, %s318_s29 }
  0x87   :  { %vm118_vm2 = vcmp.eq.s32.totalorder %v20_v57, %v117_v2  ;;  %p574_p0 = scmp.ne.s32.totalorder %s318_s29, %s573_s30  ;;  %p579_p2 = scmp.lt.s32.totalorder %s573_s30, %s573_s30 }
  0x88   :  { %540 = vmatpush3.bf16.msra.mxu0 %v539_v63  ;;  %450 = vmatmul.mubr.msk.f32.vlgmr.msra.gmra.mrb[0].mxu1 %vm118_vm2, %v603_v62 }
  0x89   :  { %541 = vmatprep.subr.bf16.mxu0 %v599_v8  ;;  %p580_p3 = por %p579_p2, %p578_p1 }
  0x8b   :  { %p581_p4 = pnand %p580_p3, %p574_p0 }
  0x8c   :  { %543 = vmatpush3.bf16.msra.mxu0 %v542_v3 }
  0x8d   :  { %544 = vmatprep.subr.bf16.mxu0 %v599_v8 }
  0x90   :  { %546 = vmatpush3.bf16.msra.mxu0 %v545_v6 }
  0x91   :  { %547 = vmatprep.subr.bf16.mxu0 %v599_v8 }
  0x94   :  { %549 = vmatpush3.bf16.msra.mxu0 %v548_v10 }
  0x95   :  { %550 = vmatprep.subr.bf16.mxu0 %v599_v8 }
  0x98   :  { %552 = vmatpush3.bf16.msra.mxu0 %v551_v13 }
  0x99   :  { %553 = vmatprep.subr.bf16.mxu0 %v599_v8 }
  0x9c   :  { %555 = vmatpush3.bf16.msra.mxu0 %v554_v16 }
  0x9d   :  { %556 = vmatprep.subr.bf16.mxu0 %v599_v8 }
  0xa0   :  { %558 = vmatpush3.bf16.msra.mxu0 %v557_v19 }
  0xa3   :  { %485 = vmatmul.mubr.msk.f32.vlgmr.msra.gmra.mrb[2].mxu0 %vm216_vm3, %v603_v62 }
 0x156   :  { %v109_v21 = vpop.f32.mrb[0].mxu0 }
 0x157   :  { %114 = vst.msk [vmem:[#allocation2] sm:$0xff] %vm113_vm4, %v109_v21  ;;  %v416_v22 = vpop.f32.mrb[1].mxu0 }
 0x15b   :  { %v203_v23 = vpop.f32.mrb[0].mxu1 }
 0x15c   :  { %v451_v24 = vpop.f32.mrb[1].mxu1  ;;  %208 = vrot.lane.b32.xlu1 %v203_v23, %s604_s28 }
 0x176   :  { %v301_v25 = vpop.f32.mrb[2].mxu0 }
 0x177   :  { %v486_v26 = vpop.f32.mrb[3].mxu0  ;;  %306 = vrot.lane.b32.xlu1 %v301_v25, %s605_s2 }
 0x1ce   :  { %v209_v27 = vpop.permute.xlu1 %208 }
 0x1cf   :  { %212 = vst.msk [vmem:[#allocation2] sm:$0xff] %vm211_vm5, %v209_v27 }
 0x1e9   :  { %v307_v8 = vpop.permute.xlu1 %306 }
 0x1ea   :  { %310 = vst.msk [vmem:[#allocation2] sm:$0xff] %vm309_vm6, %v307_v8 }
 0x1eb   :  { %584 = shalt.err (!%p581_p4)
}
 0x1ec   :  { %s585_s7 = scalar_lea.hbm %s825_s4, 128 }
 0x1ed   :  { %p586_p5 = scmp.ne.s32.totalorder %s825_s4, %s585_s7  ;;  %p589_p6 = scmp.lt.u32.totalorder %s585_s7, %s825_s4 }
 0x1ef   :  { %p591_p7 = pnand %p589_p6, %p586_p5 }
 0x1f1   :  { %594 = shalt.err (!%p591_p7)
}
 0x1f2   :  { %320 = dma.vmem_to_hbm [thread:$0]  %s318_s29, 128, %s825_s4, [#allocation3]  }
 0x1f3   :  { %595 = dma.done.wait [#allocation3], 128  }
 0x1f4   :  { %596 = vsyncadd [#allocation3], 4294967168 }
 0x1f5   :  { %324 = vsyncpa [#allocation3], 1 }

</bundles_post_ra>
